<compile_context>
chip_gen: v6e
topology: v6e:2x2x1
jax: 0.10.0
libtpu: 0.0.40
codegen_flags: <defaults>
</compile_context>

<pallas_src>
import jax
import jax.numpy as jnp
import numpy as np
from jax import lax
from jax.experimental import pallas as pl
from jax.experimental.pallas import tpu as pltpu

# cfg.input_dim / cfg.hidden_dim / cfg.param_dim
INPUT_DIM = 4
HIDDEN_DIM = 32
PARAM_DIM = 16


def seq_param_kernel(x_ref, wih_ref, whh_ref, bin_ref, wout_ref, bout_ref, o_ref):
    """Fused bi-LSTM + h_n.view(-1, 1, 2H) + linear head.

    x_ref    : (T*B, D)  bf16, time-major (row t*B + b == x[b, t, :])
    wih_ref  : (D, 8H)   bf16, [W_ih_fwd^T | W_ih_bwd^T]
    whh_ref  : (2H, 4H)  bf16, [W_hh_fwd^T ; W_hh_bwd^T]
    bin_ref  : (1, 8H)   f32,  [b_ih_f + b_hh_f | b_ih_b + b_hh_b]
    wout_ref : (2H, P)   bf16, model_param.weight^T
    bout_ref : (1, P)    f32,  model_param.bias
    o_ref    : (B, P)    f32
    """
    TB, _ = x_ref.shape
    H = whh_ref.shape[0] // 2
    B, P = o_ref.shape
    T = TB // B

    # ---- hoisted input projection: both directions + bias in ONE matmul ----
    zin = jnp.dot(x_ref[...], wih_ref[...],
                  preferred_element_type=jnp.float32) + bin_ref[...]   # (T*B, 8H) f32

    whh = whh_ref[...]                                                 # (2H, 4H) bf16

    # Block-diagonal mask so one recurrent matmul serves both directions:
    # rows 0..B-1 (fwd) see W_hh_fwd only, rows B..2B-1 (bwd) see W_hh_bwd only.
    rr = lax.broadcasted_iota(jnp.int32, (2 * B, 2 * H), 0)
    cc = lax.broadcasted_iota(jnp.int32, (2 * B, 2 * H), 1)
    dmask = ((rr < B) == (cc < H)).astype(jnp.float32)                 # (2B, 2H)

    h = jnp.zeros((2 * B, H), jnp.float32)   # rows = [fwd batch 0..B-1, bwd batch 0..B-1]
    c = jnp.zeros((2 * B, H), jnp.float32)

    # ---- fully unrolled recurrence (T is static) ----
    for t in range(T):
        z_x = jnp.concatenate(
            [zin[t * B:(t + 1) * B, 0:4 * H],                  # fwd reads x[:, t]
             zin[(T - 1 - t) * B:(T - t) * B, 4 * H:8 * H]],   # bwd reads x[:, T-1-t]
            axis=0)                                            # (2B, 4H) f32
        hd = (jnp.concatenate([h, h], axis=1) * dmask).astype(jnp.bfloat16)  # (2B, 2H)
        z = z_x + jnp.dot(hd, whh, preferred_element_type=jnp.float32)       # (2B, 4H)
        # PyTorch gate packing / order: [i, f, g, o]; elementwise math kept in f32.
        i_g = jax.nn.sigmoid(z[:, 0:H])
        f_g = jax.nn.sigmoid(z[:, H:2 * H])
        g_g = jnp.tanh(z[:, 2 * H:3 * H])
        o_g = jax.nn.sigmoid(z[:, 3 * H:4 * H])
        c = f_g * c + i_g * g_g
        h = o_g * jnp.tanh(c)

    # ---- h_n.view(-1, 1, 2H) + linear head, fused ----
    # h rows equal h_n (2, B, H) flattened row-major, so view-row k = [h[2k,:], h[2k+1,:]].
    # Select even/odd rows with tiny 0/1 permutation matmuls (MXU is idle here) instead
    # of an in-kernel sublane->lane reshape.
    h16 = h.astype(jnp.bfloat16)
    rk = lax.broadcasted_iota(jnp.int32, (B, 2 * B), 0)
    rc = lax.broadcasted_iota(jnp.int32, (B, 2 * B), 1)
    sel_even = (rc == 2 * rk).astype(jnp.float32).astype(jnp.bfloat16)       # (B, 2B)
    sel_odd = (rc == 2 * rk + 1).astype(jnp.float32).astype(jnp.bfloat16)    # (B, 2B)
    h_even = jnp.dot(sel_even, h16, preferred_element_type=jnp.float32)      # h[2k, :]
    h_odd = jnp.dot(sel_odd, h16, preferred_element_type=jnp.float32)        # h[2k+1, :]
    h_view = jnp.concatenate([h_even, h_odd], axis=1).astype(jnp.bfloat16)   # (B, 2H)

    o_ref[...] = (jnp.dot(h_view, wout_ref[...],
                          preferred_element_type=jnp.float32) + bout_ref[...])


def init_params(key):
    """Deterministic parameter init with PyTorch shapes (not a checkpoint)."""
    D, H, P = INPUT_DIM, HIDDEN_DIM, PARAM_DIM
    ks = jax.random.split(key, 10)
    s = 1.0 / np.sqrt(H)
    u = lambda k, shape: jax.random.uniform(k, shape, jnp.float32, -s, s)
    return dict(
        w_ih_f=u(ks[0], (4 * H, D)),   # weight_ih_l0
        w_hh_f=u(ks[1], (4 * H, H)),   # weight_hh_l0
        b_ih_f=u(ks[2], (4 * H,)),
        b_hh_f=u(ks[3], (4 * H,)),
        w_ih_b=u(ks[4], (4 * H, D)),   # weight_ih_l0_reverse
        w_hh_b=u(ks[5], (4 * H, H)),   # weight_hh_l0_reverse
        b_ih_b=u(ks[6], (4 * H,)),
        b_hh_b=u(ks[7], (4 * H,)),
        w_out=u(ks[8], (P, 2 * H)),    # model_param.weight
        b_out=u(ks[9], (P,)),          # model_param.bias
    )


@jax.jit
def seq_param_forward(x, params):
    B, T, D = x.shape
    H, P = HIDDEN_DIM, PARAM_DIM

    # Weight packing (tiny, one-time XLA ops): pre-transposed, direction-concatenated,
    # bf16 for the MXU's native single-pass datapath; biases stay f32.
    wih = jnp.concatenate([params["w_ih_f"].T, params["w_ih_b"].T],
                          axis=1).astype(jnp.bfloat16)                     # (D, 8H)
    whh = jnp.concatenate([params["w_hh_f"].T, params["w_hh_b"].T],
                          axis=0).astype(jnp.bfloat16)                     # (2H, 4H)
    b_in = jnp.concatenate([params["b_ih_f"] + params["b_hh_f"],
                            params["b_ih_b"] + params["b_hh_b"]]
                           ).reshape(1, 8 * H).astype(jnp.float32)         # (1, 8H)
    w_out = params["w_out"].T.astype(jnp.bfloat16)                         # (2H, P)
    b_out = params["b_out"].reshape(1, P).astype(jnp.float32)              # (1, P)

    # Time-major flatten: row t*B + b == x[b, t, :].  Keeps every in-kernel access a
    # static contiguous 2-D slice (no 3-D reshapes inside the kernel).
    x_tm = jnp.transpose(x, (1, 0, 2)).reshape(T * B, D).astype(jnp.bfloat16)

    vmem = pl.BlockSpec(memory_space=pltpu.MemorySpace.VMEM)

    # Gridless, whole-array-in-VMEM (total footprint ~10 KB).  If B ever scales, add a
    # batch grid with compiler_params=pltpu.CompilerParams(
    #     dimension_semantics=("parallel",)) so both v7x TensorCores are used, and
    # budget tiles against v7x's 64 MiB VMEM.
    out = pl.pallas_call(
        seq_param_kernel,
        out_shape=jax.ShapeDtypeStruct((B, P), jnp.float32),
        in_specs=[vmem] * 6,
        out_specs=vmem,
    )(x_tm, wih, whh, b_in, w_out, b_out)

    return out.reshape(B, 1, P)   # matches PyTorch params shape (B, 1, P)


def reference_forward(x, params):
    """Pure-JAX f32 reference mirroring PyTorch semantics, for validation."""
    B, T, _ = x.shape
    H = HIDDEN_DIM
    hi = lax.Precision.HIGHEST

    def run_dir(xs, w_ih, w_hh, b_ih, b_hh):
        def cell(carry, x_t):
            h, c = carry
            z = (jnp.dot(x_t, w_ih.T, precision=hi)
                 + jnp.dot(h, w_hh.T, precision=hi) + b_ih + b_hh)
            i = jax.nn.sigmoid(z[:, 0:H])
            f = jax.nn.sigmoid(z[:, H:2 * H])
            g = jnp.tanh(z[:, 2 * H:3 * H])
            o = jax.nn.sigmoid(z[:, 3 * H:4 * H])
            c = f * c + i * g
            h = o * jnp.tanh(c)
            return (h, c), None
        z0 = jnp.zeros((B, H), jnp.float32)
        (h, _), _ = lax.scan(cell, (z0, z0), xs)
        return h

    xs = jnp.transpose(x, (1, 0, 2))
    h_fwd = run_dir(xs, params["w_ih_f"], params["w_hh_f"],
                    params["b_ih_f"], params["b_hh_f"])
    h_bwd = run_dir(xs[::-1], params["w_ih_b"], params["w_hh_b"],
                    params["b_ih_b"], params["b_hh_b"])
    h_n = jnp.stack([h_fwd, h_bwd], axis=0)       # (2, B, H)
    h_view = h_n.reshape(-1, 1, 2 * H)            # h_n.view(-1, 1, 2H)
    return jnp.dot(h_view, params["w_out"].T, precision=hi) + params["b_out"]


if __name__ == "__main__":
    key = jax.random.PRNGKey(0)
    k_x, k_p = jax.random.split(key)

    B, T = 2, 8
    x = jax.random.normal(k_x, (B, T, INPUT_DIM), jnp.float32)
    params = init_params(k_p)

    out = jax.block_until_ready(seq_param_forward(x, params))
    ref = reference_forward(x, params)

    assert out.shape == (B, 1, PARAM_DIM), out.shape
    # The kernel feeds bf16 into the MXU (f32 accumulation, f32 gate math); the
    # reference is full-f32 (HIGHEST).  Tolerance is sized for bf16 input rounding
    # (~1e-3 level) and is still far below any structural error (wrong gate order,
    # direction, or view shows up at the ~1e-1 level).
    np.testing.assert_allclose(np.asarray(out), np.asarray(ref), rtol=2e-2, atol=1e-2)
    print("KERNEL_OK")
</pallas_src>

<mosaic_0001>
module attributes {stable_mosaic.version = 11 : i64} {
  func.func @seq_param_kernel(%arg0: memref<16x4xbf16, #tpu.memory_space<vmem>>, %arg1: memref<4x256xbf16, #tpu.memory_space<vmem>>, %arg2: memref<64x128xbf16, #tpu.memory_space<vmem>>, %arg3: memref<1x256xf32, #tpu.memory_space<vmem>>, %arg4: memref<64x16xbf16, #tpu.memory_space<vmem>>, %arg5: memref<1x16xf32, #tpu.memory_space<vmem>>, %arg6: memref<2x16xf32, #tpu.memory_space<vmem>>) attributes {dimension_semantics = [], scalar_prefetch = 0 : i64, scratch_operands = 0 : i64, tpu.core_type = #tpu.core_type<tc>} {
    %c0 = arith.constant 0 : index
    %c0_0 = arith.constant 0 : index
    %0 = vector.load %arg0[%c0, %c0_0] : memref<16x4xbf16, #tpu.memory_space<vmem>>, vector<16x4xbf16>
    %c0_1 = arith.constant 0 : index
    %c0_2 = arith.constant 0 : index
    %1 = vector.load %arg1[%c0_1, %c0_2] : memref<4x256xbf16, #tpu.memory_space<vmem>>, vector<4x256xbf16>
    %cst = arith.constant dense<0.000000e+00> : vector<16x256xf32>
    %2 = tpu.matmul %0, %1, %cst {dimension_numbers = #tpu.dot_dimension_numbers<[1], [0], [0], [1], [0, 0, 1, 1], [], []>} : vector<16x4xbf16>, vector<4x256xbf16>, vector<16x256xf32> -> vector<16x256xf32>
    %c0_3 = arith.constant 0 : index
    %c0_4 = arith.constant 0 : index
    %3 = vector.load %arg3[%c0_3, %c0_4] : memref<1x256xf32, #tpu.memory_space<vmem>>, vector<1x256xf32>
    %4 = vector.broadcast %3 : vector<1x256xf32> to vector<16x256xf32>
    %5 = arith.addf %2, %4 : vector<16x256xf32>
    %c0_5 = arith.constant 0 : index
    %c0_6 = arith.constant 0 : index
    %6 = vector.load %arg2[%c0_5, %c0_6] : memref<64x128xbf16, #tpu.memory_space<vmem>>, vector<64x128xbf16>
    %7 = tpu.iota {dimensions = array<i32: 0>} : vector<4x64xi32>
    %8 = tpu.iota {dimensions = array<i32: 1>} : vector<4x64xi32>
    %c2_i32 = arith.constant 2 : i32
    %9 = vector.broadcast %c2_i32 : i32 to vector<4x64xi32>
    %10 = arith.cmpi slt, %7, %9 : vector<4x64xi32>
    %c32_i32 = arith.constant 32 : i32
    %11 = vector.broadcast %c32_i32 : i32 to vector<4x64xi32>
    %12 = arith.cmpi slt, %8, %11 : vector<4x64xi32>
    %13 = arith.xori %10, %12 : vector<4x64xi1>
    %cst_7 = arith.constant dense<true> : vector<4x64xi1>
    %14 = arith.xori %13, %cst_7 : vector<4x64xi1>
    %15 = arith.extui %14 : vector<4x64xi1> to vector<4x64xi32>
    %16 = arith.sitofp %15 : vector<4x64xi32> to vector<4x64xf32>
    %cst_8 = arith.constant 0.000000e+00 : f32
    %17 = vector.broadcast %cst_8 : f32 to vector<4x32xf32>
    %cst_9 = arith.constant 0.000000e+00 : f32
    %18 = vector.broadcast %cst_9 : f32 to vector<4x32xf32>
    %19 = vector.extract_strided_slice %5 {offsets = [0, 0], sizes = [2, 128], strides = [1, 1]} : vector<16x256xf32> to vector<2x128xf32>
    %20 = vector.extract_strided_slice %5 {offsets = [14, 128], sizes = [2, 128], strides = [1, 1]} : vector<16x256xf32> to vector<2x128xf32>
    %21 = tpu.concatenate %19, %20 in 0 : vector<2x128xf32>, vector<2x128xf32> -> vector<4x128xf32>
    %22 = tpu.concatenate %17, %17 in 1 : vector<4x32xf32>, vector<4x32xf32> -> vector<4x64xf32>
    %23 = arith.mulf %22, %16 : vector<4x64xf32>
    %24 = arith.truncf %23 : vector<4x64xf32> to vector<4x64xbf16>
    %cst_10 = arith.constant dense<0.000000e+00> : vector<4x128xf32>
    %25 = tpu.matmul %24, %6, %cst_10 {dimension_numbers = #tpu.dot_dimension_numbers<[1], [0], [0], [1], [0, 0, 1, 1], [], []>} : vector<4x64xbf16>, vector<64x128xbf16>, vector<4x128xf32> -> vector<4x128xf32>
    %26 = arith.addf %21, %25 : vector<4x128xf32>
    %27 = vector.extract_strided_slice %26 {offsets = [0, 0], sizes = [4, 32], strides = [1, 1]} : vector<4x128xf32> to vector<4x32xf32>
    %28 = arith.negf %27 : vector<4x32xf32>
    %29 = math.exp %28 : vector<4x32xf32>
    %cst_11 = arith.constant 1.000000e+00 : f32
    %30 = vector.broadcast %cst_11 : f32 to vector<4x32xf32>
    %31 = arith.addf %30, %29 : vector<4x32xf32>
    %32 = arith.divf %30, %31 : vector<4x32xf32>
    %33 = vector.extract_strided_slice %26 {offsets = [0, 32], sizes = [4, 32], strides = [1, 1]} : vector<4x128xf32> to vector<4x32xf32>
    %34 = arith.negf %33 : vector<4x32xf32>
    %35 = math.exp %34 : vector<4x32xf32>
    %cst_12 = arith.constant 1.000000e+00 : f32
    %36 = vector.broadcast %cst_12 : f32 to vector<4x32xf32>
    %37 = arith.addf %36, %35 : vector<4x32xf32>
    %38 = arith.divf %36, %37 : vector<4x32xf32>
    %39 = vector.extract_strided_slice %26 {offsets = [0, 64], sizes = [4, 32], strides = [1, 1]} : vector<4x128xf32> to vector<4x32xf32>
    %40 = math.tanh %39 : vector<4x32xf32>
    %41 = vector.extract_strided_slice %26 {offsets = [0, 96], sizes = [4, 32], strides = [1, 1]} : vector<4x128xf32> to vector<4x32xf32>
    %42 = arith.negf %41 : vector<4x32xf32>
    %43 = math.exp %42 : vector<4x32xf32>
    %cst_13 = arith.constant 1.000000e+00 : f32
    %44 = vector.broadcast %cst_13 : f32 to vector<4x32xf32>
    %45 = arith.addf %44, %43 : vector<4x32xf32>
    %46 = arith.divf %44, %45 : vector<4x32xf32>
    %47 = arith.mulf %38, %18 : vector<4x32xf32>
    %48 = arith.mulf %32, %40 : vector<4x32xf32>
    %49 = arith.addf %47, %48 : vector<4x32xf32>
    %50 = math.tanh %49 : vector<4x32xf32>
    %51 = arith.mulf %46, %50 : vector<4x32xf32>
    %52 = vector.extract_strided_slice %5 {offsets = [2, 0], sizes = [2, 128], strides = [1, 1]} : vector<16x256xf32> to vector<2x128xf32>
    %53 = vector.extract_strided_slice %5 {offsets = [12, 128], sizes = [2, 128], strides = [1, 1]} : vector<16x256xf32> to vector<2x128xf32>
    %54 = tpu.concatenate %52, %53 in 0 : vector<2x128xf32>, vector<2x128xf32> -> vector<4x128xf32>
    %55 = tpu.concatenate %51, %51 in 1 : vector<4x32xf32>, vector<4x32xf32> -> vector<4x64xf32>
    %56 = arith.mulf %55, %16 : vector<4x64xf32>
    %57 = arith.truncf %56 : vector<4x64xf32> to vector<4x64xbf16>
    %cst_14 = arith.constant dense<0.000000e+00> : vector<4x128xf32>
    %58 = tpu.matmul %57, %6, %cst_14 {dimension_numbers = #tpu.dot_dimension_numbers<[1], [0], [0], [1], [0, 0, 1, 1], [], []>} : vector<4x64xbf16>, vector<64x128xbf16>, vector<4x128xf32> -> vector<4x128xf32>
    %59 = arith.addf %54, %58 : vector<4x128xf32>
    %60 = vector.extract_strided_slice %59 {offsets = [0, 0], sizes = [4, 32], strides = [1, 1]} : vector<4x128xf32> to vector<4x32xf32>
    %61 = arith.negf %60 : vector<4x32xf32>
    %62 = math.exp %61 : vector<4x32xf32>
    %cst_15 = arith.constant 1.000000e+00 : f32
    %63 = vector.broadcast %cst_15 : f32 to vector<4x32xf32>
    %64 = arith.addf %63, %62 : vector<4x32xf32>
    %65 = arith.divf %63, %64 : vector<4x32xf32>
    %66 = vector.extract_strided_slice %59 {offsets = [0, 32], sizes = [4, 32], strides = [1, 1]} : vector<4x128xf32> to vector<4x32xf32>
    %67 = arith.negf %66 : vector<4x32xf32>
    %68 = math.exp %67 : vector<4x32xf32>
    %cst_16 = arith.constant 1.000000e+00 : f32
    %69 = vector.broadcast %cst_16 : f32 to vector<4x32xf32>
    %70 = arith.addf %69, %68 : vector<4x32xf32>
    %71 = arith.divf %69, %70 : vector<4x32xf32>
    %72 = vector.extract_strided_slice %59 {offsets = [0, 64], sizes = [4, 32], strides = [1, 1]} : vector<4x128xf32> to vector<4x32xf32>
    %73 = math.tanh %72 : vector<4x32xf32>
    %74 = vector.extract_strided_slice %59 {offsets = [0, 96], sizes = [4, 32], strides = [1, 1]} : vector<4x128xf32> to vector<4x32xf32>
    %75 = arith.negf %74 : vector<4x32xf32>
    %76 = math.exp %75 : vector<4x32xf32>
    %cst_17 = arith.constant 1.000000e+00 : f32
    %77 = vector.broadcast %cst_17 : f32 to vector<4x32xf32>
    %78 = arith.addf %77, %76 : vector<4x32xf32>
    %79 = arith.divf %77, %78 : vector<4x32xf32>
    %80 = arith.mulf %71, %49 : vector<4x32xf32>
    %81 = arith.mulf %65, %73 : vector<4x32xf32>
    %82 = arith.addf %80, %81 : vector<4x32xf32>
    %83 = math.tanh %82 : vector<4x32xf32>
    %84 = arith.mulf %79, %83 : vector<4x32xf32>
    %85 = vector.extract_strided_slice %5 {offsets = [4, 0], sizes = [2, 128], strides = [1, 1]} : vector<16x256xf32> to vector<2x128xf32>
    %86 = vector.extract_strided_slice %5 {offsets = [10, 128], sizes = [2, 128], strides = [1, 1]} : vector<16x256xf32> to vector<2x128xf32>
    %87 = tpu.concatenate %85, %86 in 0 : vector<2x128xf32>, vector<2x128xf32> -> vector<4x128xf32>
    %88 = tpu.concatenate %84, %84 in 1 : vector<4x32xf32>, vector<4x32xf32> -> vector<4x64xf32>
    %89 = arith.mulf %88, %16 : vector<4x64xf32>
    %90 = arith.truncf %89 : vector<4x64xf32> to vector<4x64xbf16>
    %cst_18 = arith.constant dense<0.000000e+00> : vector<4x128xf32>
    %91 = tpu.matmul %90, %6, %cst_18 {dimension_numbers = #tpu.dot_dimension_numbers<[1], [0], [0], [1], [0, 0, 1, 1], [], []>} : vector<4x64xbf16>, vector<64x128xbf16>, vector<4x128xf32> -> vector<4x128xf32>
    %92 = arith.addf %87, %91 : vector<4x128xf32>
    %93 = vector.extract_strided_slice %92 {offsets = [0, 0], sizes = [4, 32], strides = [1, 1]} : vector<4x128xf32> to vector<4x32xf32>
    %94 = arith.negf %93 : vector<4x32xf32>
    %95 = math.exp %94 : vector<4x32xf32>
    %cst_19 = arith.constant 1.000000e+00 : f32
    %96 = vector.broadcast %cst_19 : f32 to vector<4x32xf32>
    %97 = arith.addf %96, %95 : vector<4x32xf32>
    %98 = arith.divf %96, %97 : vector<4x32xf32>
    %99 = vector.extract_strided_slice %92 {offsets = [0, 32], sizes = [4, 32], strides = [1, 1]} : vector<4x128xf32> to vector<4x32xf32>
    %100 = arith.negf %99 : vector<4x32xf32>
    %101 = math.exp %100 : vector<4x32xf32>
    %cst_20 = arith.constant 1.000000e+00 : f32
    %102 = vector.broadcast %cst_20 : f32 to vector<4x32xf32>
    %103 = arith.addf %102, %101 : vector<4x32xf32>
    %104 = arith.divf %102, %103 : vector<4x32xf32>
    %105 = vector.extract_strided_slice %92 {offsets = [0, 64], sizes = [4, 32], strides = [1, 1]} : vector<4x128xf32> to vector<4x32xf32>
    %106 = math.tanh %105 : vector<4x32xf32>
    %107 = vector.extract_strided_slice %92 {offsets = [0, 96], sizes = [4, 32], strides = [1, 1]} : vector<4x128xf32> to vector<4x32xf32>
    %108 = arith.negf %107 : vector<4x32xf32>
    %109 = math.exp %108 : vector<4x32xf32>
    %cst_21 = arith.constant 1.000000e+00 : f32
    %110 = vector.broadcast %cst_21 : f32 to vector<4x32xf32>
    %111 = arith.addf %110, %109 : vector<4x32xf32>
    %112 = arith.divf %110, %111 : vector<4x32xf32>
    %113 = arith.mulf %104, %82 : vector<4x32xf32>
    %114 = arith.mulf %98, %106 : vector<4x32xf32>
    %115 = arith.addf %113, %114 : vector<4x32xf32>
    %116 = math.tanh %115 : vector<4x32xf32>
    %117 = arith.mulf %112, %116 : vector<4x32xf32>
    %118 = vector.extract_strided_slice %5 {offsets = [6, 0], sizes = [2, 128], strides = [1, 1]} : vector<16x256xf32> to vector<2x128xf32>
    %119 = vector.extract_strided_slice %5 {offsets = [8, 128], sizes = [2, 128], strides = [1, 1]} : vector<16x256xf32> to vector<2x128xf32>
    %120 = tpu.concatenate %118, %119 in 0 : vector<2x128xf32>, vector<2x128xf32> -> vector<4x128xf32>
    %121 = tpu.concatenate %117, %117 in 1 : vector<4x32xf32>, vector<4x32xf32> -> vector<4x64xf32>
    %122 = arith.mulf %121, %16 : vector<4x64xf32>
    %123 = arith.truncf %122 : vector<4x64xf32> to vector<4x64xbf16>
    %cst_22 = arith.constant dense<0.000000e+00> : vector<4x128xf32>
    %124 = tpu.matmul %123, %6, %cst_22 {dimension_numbers = #tpu.dot_dimension_numbers<[1], [0], [0], [1], [0, 0, 1, 1], [], []>} : vector<4x64xbf16>, vector<64x128xbf16>, vector<4x128xf32> -> vector<4x128xf32>
    %125 = arith.addf %120, %124 : vector<4x128xf32>
    %126 = vector.extract_strided_slice %125 {offsets = [0, 0], sizes = [4, 32], strides = [1, 1]} : vector<4x128xf32> to vector<4x32xf32>
    %127 = arith.negf %126 : vector<4x32xf32>
    %128 = math.exp %127 : vector<4x32xf32>
    %cst_23 = arith.constant 1.000000e+00 : f32
    %129 = vector.broadcast %cst_23 : f32 to vector<4x32xf32>
    %130 = arith.addf %129, %128 : vector<4x32xf32>
    %131 = arith.divf %129, %130 : vector<4x32xf32>
    %132 = vector.extract_strided_slice %125 {offsets = [0, 32], sizes = [4, 32], strides = [1, 1]} : vector<4x128xf32> to vector<4x32xf32>
    %133 = arith.negf %132 : vector<4x32xf32>
    %134 = math.exp %133 : vector<4x32xf32>
    %cst_24 = arith.constant 1.000000e+00 : f32
    %135 = vector.broadcast %cst_24 : f32 to vector<4x32xf32>
    %136 = arith.addf %135, %134 : vector<4x32xf32>
    %137 = arith.divf %135, %136 : vector<4x32xf32>
    %138 = vector.extract_strided_slice %125 {offsets = [0, 64], sizes = [4, 32], strides = [1, 1]} : vector<4x128xf32> to vector<4x32xf32>
    %139 = math.tanh %138 : vector<4x32xf32>
    %140 = vector.extract_strided_slice %125 {offsets = [0, 96], sizes = [4, 32], strides = [1, 1]} : vector<4x128xf32> to vector<4x32xf32>
    %141 = arith.negf %140 : vector<4x32xf32>
    %142 = math.exp %141 : vector<4x32xf32>
    %cst_25 = arith.constant 1.000000e+00 : f32
    %143 = vector.broadcast %cst_25 : f32 to vector<4x32xf32>
    %144 = arith.addf %143, %142 : vector<4x32xf32>
    %145 = arith.divf %143, %144 : vector<4x32xf32>
    %146 = arith.mulf %137, %115 : vector<4x32xf32>
    %147 = arith.mulf %131, %139 : vector<4x32xf32>
    %148 = arith.addf %146, %147 : vector<4x32xf32>
    %149 = math.tanh %148 : vector<4x32xf32>
    %150 = arith.mulf %145, %149 : vector<4x32xf32>
    %151 = vector.extract_strided_slice %5 {offsets = [8, 0], sizes = [2, 128], strides = [1, 1]} : vector<16x256xf32> to vector<2x128xf32>
    %152 = vector.extract_strided_slice %5 {offsets = [6, 128], sizes = [2, 128], strides = [1, 1]} : vector<16x256xf32> to vector<2x128xf32>
    %153 = tpu.concatenate %151, %152 in 0 : vector<2x128xf32>, vector<2x128xf32> -> vector<4x128xf32>
    %154 = tpu.concatenate %150, %150 in 1 : vector<4x32xf32>, vector<4x32xf32> -> vector<4x64xf32>
    %155 = arith.mulf %154, %16 : vector<4x64xf32>
    %156 = arith.truncf %155 : vector<4x64xf32> to vector<4x64xbf16>
    %cst_26 = arith.constant dense<0.000000e+00> : vector<4x128xf32>
    %157 = tpu.matmul %156, %6, %cst_26 {dimension_numbers = #tpu.dot_dimension_numbers<[1], [0], [0], [1], [0, 0, 1, 1], [], []>} : vector<4x64xbf16>, vector<64x128xbf16>, vector<4x128xf32> -> vector<4x128xf32>
    %158 = arith.addf %153, %157 : vector<4x128xf32>
    %159 = vector.extract_strided_slice %158 {offsets = [0, 0], sizes = [4, 32], strides = [1, 1]} : vector<4x128xf32> to vector<4x32xf32>
    %160 = arith.negf %159 : vector<4x32xf32>
    %161 = math.exp %160 : vector<4x32xf32>
    %cst_27 = arith.constant 1.000000e+00 : f32
    %162 = vector.broadcast %cst_27 : f32 to vector<4x32xf32>
    %163 = arith.addf %162, %161 : vector<4x32xf32>
    %164 = arith.divf %162, %163 : vector<4x32xf32>
    %165 = vector.extract_strided_slice %158 {offsets = [0, 32], sizes = [4, 32], strides = [1, 1]} : vector<4x128xf32> to vector<4x32xf32>
    %166 = arith.negf %165 : vector<4x32xf32>
    %167 = math.exp %166 : vector<4x32xf32>
    %cst_28 = arith.constant 1.000000e+00 : f32
    %168 = vector.broadcast %cst_28 : f32 to vector<4x32xf32>
    %169 = arith.addf %168, %167 : vector<4x32xf32>
    %170 = arith.divf %168, %169 : vector<4x32xf32>
    %171 = vector.extract_strided_slice %158 {offsets = [0, 64], sizes = [4, 32], strides = [1, 1]} : vector<4x128xf32> to vector<4x32xf32>
    %172 = math.tanh %171 : vector<4x32xf32>
    %173 = vector.extract_strided_slice %158 {offsets = [0, 96], sizes = [4, 32], strides = [1, 1]} : vector<4x128xf32> to vector<4x32xf32>
    %174 = arith.negf %173 : vector<4x32xf32>
    %175 = math.exp %174 : vector<4x32xf32>
    %cst_29 = arith.constant 1.000000e+00 : f32
    %176 = vector.broadcast %cst_29 : f32 to vector<4x32xf32>
    %177 = arith.addf %176, %175 : vector<4x32xf32>
    %178 = arith.divf %176, %177 : vector<4x32xf32>
    %179 = arith.mulf %170, %148 : vector<4x32xf32>
    %180 = arith.mulf %164, %172 : vector<4x32xf32>
    %181 = arith.addf %179, %180 : vector<4x32xf32>
    %182 = math.tanh %181 : vector<4x32xf32>
    %183 = arith.mulf %178, %182 : vector<4x32xf32>
    %184 = vector.extract_strided_slice %5 {offsets = [10, 0], sizes = [2, 128], strides = [1, 1]} : vector<16x256xf32> to vector<2x128xf32>
    %185 = vector.extract_strided_slice %5 {offsets = [4, 128], sizes = [2, 128], strides = [1, 1]} : vector<16x256xf32> to vector<2x128xf32>
    %186 = tpu.concatenate %184, %185 in 0 : vector<2x128xf32>, vector<2x128xf32> -> vector<4x128xf32>
    %187 = tpu.concatenate %183, %183 in 1 : vector<4x32xf32>, vector<4x32xf32> -> vector<4x64xf32>
    %188 = arith.mulf %187, %16 : vector<4x64xf32>
    %189 = arith.truncf %188 : vector<4x64xf32> to vector<4x64xbf16>
    %cst_30 = arith.constant dense<0.000000e+00> : vector<4x128xf32>
    %190 = tpu.matmul %189, %6, %cst_30 {dimension_numbers = #tpu.dot_dimension_numbers<[1], [0], [0], [1], [0, 0, 1, 1], [], []>} : vector<4x64xbf16>, vector<64x128xbf16>, vector<4x128xf32> -> vector<4x128xf32>
    %191 = arith.addf %186, %190 : vector<4x128xf32>
    %192 = vector.extract_strided_slice %191 {offsets = [0, 0], sizes = [4, 32], strides = [1, 1]} : vector<4x128xf32> to vector<4x32xf32>
    %193 = arith.negf %192 : vector<4x32xf32>
    %194 = math.exp %193 : vector<4x32xf32>
    %cst_31 = arith.constant 1.000000e+00 : f32
    %195 = vector.broadcast %cst_31 : f32 to vector<4x32xf32>
    %196 = arith.addf %195, %194 : vector<4x32xf32>
    %197 = arith.divf %195, %196 : vector<4x32xf32>
    %198 = vector.extract_strided_slice %191 {offsets = [0, 32], sizes = [4, 32], strides = [1, 1]} : vector<4x128xf32> to vector<4x32xf32>
    %199 = arith.negf %198 : vector<4x32xf32>
    %200 = math.exp %199 : vector<4x32xf32>
    %cst_32 = arith.constant 1.000000e+00 : f32
    %201 = vector.broadcast %cst_32 : f32 to vector<4x32xf32>
    %202 = arith.addf %201, %200 : vector<4x32xf32>
    %203 = arith.divf %201, %202 : vector<4x32xf32>
    %204 = vector.extract_strided_slice %191 {offsets = [0, 64], sizes = [4, 32], strides = [1, 1]} : vector<4x128xf32> to vector<4x32xf32>
    %205 = math.tanh %204 : vector<4x32xf32>
    %206 = vector.extract_strided_slice %191 {offsets = [0, 96], sizes = [4, 32], strides = [1, 1]} : vector<4x128xf32> to vector<4x32xf32>
    %207 = arith.negf %206 : vector<4x32xf32>
    %208 = math.exp %207 : vector<4x32xf32>
    %cst_33 = arith.constant 1.000000e+00 : f32
    %209 = vector.broadcast %cst_33 : f32 to vector<4x32xf32>
    %210 = arith.addf %209, %208 : vector<4x32xf32>
    %211 = arith.divf %209, %210 : vector<4x32xf32>
    %212 = arith.mulf %203, %181 : vector<4x32xf32>
    %213 = arith.mulf %197, %205 : vector<4x32xf32>
    %214 = arith.addf %212, %213 : vector<4x32xf32>
    %215 = math.tanh %214 : vector<4x32xf32>
    %216 = arith.mulf %211, %215 : vector<4x32xf32>
    %217 = vector.extract_strided_slice %5 {offsets = [12, 0], sizes = [2, 128], strides = [1, 1]} : vector<16x256xf32> to vector<2x128xf32>
    %218 = vector.extract_strided_slice %5 {offsets = [2, 128], sizes = [2, 128], strides = [1, 1]} : vector<16x256xf32> to vector<2x128xf32>
    %219 = tpu.concatenate %217, %218 in 0 : vector<2x128xf32>, vector<2x128xf32> -> vector<4x128xf32>
    %220 = tpu.concatenate %216, %216 in 1 : vector<4x32xf32>, vector<4x32xf32> -> vector<4x64xf32>
    %221 = arith.mulf %220, %16 : vector<4x64xf32>
    %222 = arith.truncf %221 : vector<4x64xf32> to vector<4x64xbf16>
    %cst_34 = arith.constant dense<0.000000e+00> : vector<4x128xf32>
    %223 = tpu.matmul %222, %6, %cst_34 {dimension_numbers = #tpu.dot_dimension_numbers<[1], [0], [0], [1], [0, 0, 1, 1], [], []>} : vector<4x64xbf16>, vector<64x128xbf16>, vector<4x128xf32> -> vector<4x128xf32>
    %224 = arith.addf %219, %223 : vector<4x128xf32>
    %225 = vector.extract_strided_slice %224 {offsets = [0, 0], sizes = [4, 32], strides = [1, 1]} : vector<4x128xf32> to vector<4x32xf32>
    %226 = arith.negf %225 : vector<4x32xf32>
    %227 = math.exp %226 : vector<4x32xf32>
    %cst_35 = arith.constant 1.000000e+00 : f32
    %228 = vector.broadcast %cst_35 : f32 to vector<4x32xf32>
    %229 = arith.addf %228, %227 : vector<4x32xf32>
    %230 = arith.divf %228, %229 : vector<4x32xf32>
    %231 = vector.extract_strided_slice %224 {offsets = [0, 32], sizes = [4, 32], strides = [1, 1]} : vector<4x128xf32> to vector<4x32xf32>
    %232 = arith.negf %231 : vector<4x32xf32>
    %233 = math.exp %232 : vector<4x32xf32>
    %cst_36 = arith.constant 1.000000e+00 : f32
    %234 = vector.broadcast %cst_36 : f32 to vector<4x32xf32>
    %235 = arith.addf %234, %233 : vector<4x32xf32>
    %236 = arith.divf %234, %235 : vector<4x32xf32>
    %237 = vector.extract_strided_slice %224 {offsets = [0, 64], sizes = [4, 32], strides = [1, 1]} : vector<4x128xf32> to vector<4x32xf32>
    %238 = math.tanh %237 : vector<4x32xf32>
    %239 = vector.extract_strided_slice %224 {offsets = [0, 96], sizes = [4, 32], strides = [1, 1]} : vector<4x128xf32> to vector<4x32xf32>
    %240 = arith.negf %239 : vector<4x32xf32>
    %241 = math.exp %240 : vector<4x32xf32>
    %cst_37 = arith.constant 1.000000e+00 : f32
    %242 = vector.broadcast %cst_37 : f32 to vector<4x32xf32>
    %243 = arith.addf %242, %241 : vector<4x32xf32>
    %244 = arith.divf %242, %243 : vector<4x32xf32>
    %245 = arith.mulf %236, %214 : vector<4x32xf32>
    %246 = arith.mulf %230, %238 : vector<4x32xf32>
    %247 = arith.addf %245, %246 : vector<4x32xf32>
    %248 = math.tanh %247 : vector<4x32xf32>
    %249 = arith.mulf %244, %248 : vector<4x32xf32>
    %250 = vector.extract_strided_slice %5 {offsets = [14, 0], sizes = [2, 128], strides = [1, 1]} : vector<16x256xf32> to vector<2x128xf32>
    %251 = vector.extract_strided_slice %5 {offsets = [0, 128], sizes = [2, 128], strides = [1, 1]} : vector<16x256xf32> to vector<2x128xf32>
    %252 = tpu.concatenate %250, %251 in 0 : vector<2x128xf32>, vector<2x128xf32> -> vector<4x128xf32>
    %253 = tpu.concatenate %249, %249 in 1 : vector<4x32xf32>, vector<4x32xf32> -> vector<4x64xf32>
    %254 = arith.mulf %253, %16 : vector<4x64xf32>
    %255 = arith.truncf %254 : vector<4x64xf32> to vector<4x64xbf16>
    %cst_38 = arith.constant dense<0.000000e+00> : vector<4x128xf32>
    %256 = tpu.matmul %255, %6, %cst_38 {dimension_numbers = #tpu.dot_dimension_numbers<[1], [0], [0], [1], [0, 0, 1, 1], [], []>} : vector<4x64xbf16>, vector<64x128xbf16>, vector<4x128xf32> -> vector<4x128xf32>
    %257 = arith.addf %252, %256 : vector<4x128xf32>
    %258 = vector.extract_strided_slice %257 {offsets = [0, 0], sizes = [4, 32], strides = [1, 1]} : vector<4x128xf32> to vector<4x32xf32>
    %259 = arith.negf %258 : vector<4x32xf32>
    %260 = math.exp %259 : vector<4x32xf32>
    %cst_39 = arith.constant 1.000000e+00 : f32
    %261 = vector.broadcast %cst_39 : f32 to vector<4x32xf32>
    %262 = arith.addf %261, %260 : vector<4x32xf32>
    %263 = arith.divf %261, %262 : vector<4x32xf32>
    %264 = vector.extract_strided_slice %257 {offsets = [0, 32], sizes = [4, 32], strides = [1, 1]} : vector<4x128xf32> to vector<4x32xf32>
    %265 = arith.negf %264 : vector<4x32xf32>
    %266 = math.exp %265 : vector<4x32xf32>
    %cst_40 = arith.constant 1.000000e+00 : f32
    %267 = vector.broadcast %cst_40 : f32 to vector<4x32xf32>
    %268 = arith.addf %267, %266 : vector<4x32xf32>
    %269 = arith.divf %267, %268 : vector<4x32xf32>
    %270 = vector.extract_strided_slice %257 {offsets = [0, 64], sizes = [4, 32], strides = [1, 1]} : vector<4x128xf32> to vector<4x32xf32>
    %271 = math.tanh %270 : vector<4x32xf32>
    %272 = vector.extract_strided_slice %257 {offsets = [0, 96], sizes = [4, 32], strides = [1, 1]} : vector<4x128xf32> to vector<4x32xf32>
    %273 = arith.negf %272 : vector<4x32xf32>
    %274 = math.exp %273 : vector<4x32xf32>
    %cst_41 = arith.constant 1.000000e+00 : f32
    %275 = vector.broadcast %cst_41 : f32 to vector<4x32xf32>
    %276 = arith.addf %275, %274 : vector<4x32xf32>
    %277 = arith.divf %275, %276 : vector<4x32xf32>
    %278 = arith.mulf %269, %247 : vector<4x32xf32>
    %279 = arith.mulf %263, %271 : vector<4x32xf32>
    %280 = arith.addf %278, %279 : vector<4x32xf32>
    %281 = math.tanh %280 : vector<4x32xf32>
    %282 = arith.mulf %277, %281 : vector<4x32xf32>
    %283 = arith.truncf %282 : vector<4x32xf32> to vector<4x32xbf16>
    %284 = tpu.iota {dimensions = array<i32: 0>} : vector<2x4xi32>
    %285 = tpu.iota {dimensions = array<i32: 1>} : vector<2x4xi32>
    %c2_i32_42 = arith.constant 2 : i32
    %286 = vector.broadcast %c2_i32_42 : i32 to vector<2x4xi32>
    %287 = arith.muli %286, %284 : vector<2x4xi32>
    %288 = arith.cmpi eq, %285, %287 : vector<2x4xi32>
    %289 = arith.extui %288 : vector<2x4xi1> to vector<2x4xi32>
    %290 = arith.sitofp %289 : vector<2x4xi32> to vector<2x4xf32>
    %291 = arith.truncf %290 : vector<2x4xf32> to vector<2x4xbf16>
    %c2_i32_43 = arith.constant 2 : i32
    %292 = vector.broadcast %c2_i32_43 : i32 to vector<2x4xi32>
    %293 = arith.muli %292, %284 : vector<2x4xi32>
    %c1_i32 = arith.constant 1 : i32
    %294 = vector.broadcast %c1_i32 : i32 to vector<2x4xi32>
    %295 = arith.addi %293, %294 : vector<2x4xi32>
    %296 = arith.cmpi eq, %285, %295 : vector<2x4xi32>
    %297 = arith.extui %296 : vector<2x4xi1> to vector<2x4xi32>
    %298 = arith.sitofp %297 : vector<2x4xi32> to vector<2x4xf32>
    %299 = arith.truncf %298 : vector<2x4xf32> to vector<2x4xbf16>
    %cst_44 = arith.constant dense<0.000000e+00> : vector<2x32xf32>
    %300 = tpu.matmul %291, %283, %cst_44 {dimension_numbers = #tpu.dot_dimension_numbers<[1], [0], [0], [1], [0, 0, 1, 1], [], []>} : vector<2x4xbf16>, vector<4x32xbf16>, vector<2x32xf32> -> vector<2x32xf32>
    %cst_45 = arith.constant dense<0.000000e+00> : vector<2x32xf32>
    %301 = tpu.matmul %299, %283, %cst_45 {dimension_numbers = #tpu.dot_dimension_numbers<[1], [0], [0], [1], [0, 0, 1, 1], [], []>} : vector<2x4xbf16>, vector<4x32xbf16>, vector<2x32xf32> -> vector<2x32xf32>
    %302 = tpu.concatenate %300, %301 in 1 : vector<2x32xf32>, vector<2x32xf32> -> vector<2x64xf32>
    %303 = arith.truncf %302 : vector<2x64xf32> to vector<2x64xbf16>
    %c0_46 = arith.constant 0 : index
    %c0_47 = arith.constant 0 : index
    %304 = vector.load %arg4[%c0_46, %c0_47] : memref<64x16xbf16, #tpu.memory_space<vmem>>, vector<64x16xbf16>
    %cst_48 = arith.constant dense<0.000000e+00> : vector<2x16xf32>
    %305 = tpu.matmul %303, %304, %cst_48 {dimension_numbers = #tpu.dot_dimension_numbers<[1], [0], [0], [1], [0, 0, 1, 1], [], []>} : vector<2x64xbf16>, vector<64x16xbf16>, vector<2x16xf32> -> vector<2x16xf32>
    %c0_49 = arith.constant 0 : index
    %c0_50 = arith.constant 0 : index
    %306 = vector.load %arg5[%c0_49, %c0_50] : memref<1x16xf32, #tpu.memory_space<vmem>>, vector<1x16xf32>
    %307 = vector.broadcast %306 : vector<1x16xf32> to vector<2x16xf32>
    %308 = arith.addf %305, %307 : vector<2x16xf32>
    %c0_51 = arith.constant 0 : index
    %c0_52 = arith.constant 0 : index
    %309 = vector.load %arg6[%c0_51, %c0_52] : memref<2x16xf32, #tpu.memory_space<vmem>>, vector<2x16xf32>
    tpu.vector_store %arg6[%c0_51, %c0_52], %308 {strides = array<i32>} : memref<2x16xf32, #tpu.memory_space<vmem>>, vector<2x16xf32>,
    return
  }
}

</mosaic_0001>

<bundles_post_ra>
// kernel: seq_param_forward.1
= control target key start
LH: loop header
LB: loop body
LE: loop exit
PB: predicated region body
PF: predicated region fallthrough
CT: control target
= control target key end

     0   :  { %vm58_vm0 = vcmask 1041408   ;;  %v1317_v1 = vmov 0.0   ;;  %v30_v5 = vlaneseq  ;;  %v1318_v8 = vmov 0   ;;  %s1611_s0 = inlined_call_operand.vmem [shape: bf16[16,4], index: 0, kind: input, shape index: {}]   ;;  %s1612_s1 = inlined_call_operand.vmem [shape: bf16[4,256], index: 1, kind: input, shape index: {}]   ;;  %s1613_s2 = inlined_call_operand.vmem [shape: bf16[64,128], index: 2, kind: input, shape index: {}]   ;;  %s1614_s3 = inlined_call_operand.vmem [shape: f32[1,256], index: 3, kind: input, shape index: {}]   ;;  %s1615_s4 = inlined_call_operand.vmem [shape: bf16[64,16], index: 4, kind: input, shape index: {}]   ;;  %s1616_s5 = inlined_call_operand.vmem [shape: f32[1,16], index: 5, kind: input, shape index: {}]   ;;  %s1617_s6 = inlined_call_operand.hbm [shape: f32[2,16], index: 6, kind: output, shape index: {}]  }
   0x1   :  { %v1012_v0 = vld.sshfl [vmem:[%s1612_s1] sm:$0x33 pattern:$0x76325410]  ;;  %1095 = vmatprep.subr.bf16.mxu1 %v1317_v1  ;;  %v1366_v3 = vld [vmem:[%s1613_s2 + $0x18] sm:$0xff]   ;;  %v1377_v7 = vld [vmem:[%s1613_s2 + $0x10] sm:$0xff]   ;;  %97 = vmatprep.mubr.bf16.mxu0 %v1318_v8 }
   0x2   :  { %v53_v2 = vcombine.high %v1012_v0, %v1012_v0  ;;  %v60_v4 = vsel %vm58_vm0, %v1012_v0, 0  ;;  %v1223_v6 = vld [vmem:[%s1611_s0] sm:$0xff]   ;;  %1096 = vmatpush3.bf16.msra.mxu1 %v1366_v3  ;;  %vm54_vm1 = vcmask 31744   ;;  %vm1319_vm2 = vmmov 0   ;;  %v1387_v10 = vld [vmem:[%s1613_s2 + $0x8] sm:$0xff]  }
   0x3   :  { %1097 = vmatprep.subr.bf16.mxu1 %v1317_v1  ;;  %1103 = vmatprep.mubr.msk.bf16.mxu1 %vm1319_vm2, %v1317_v1  ;;  %v1382_v9 = vshrl.u32 %v30_v5, 7  ;;  %v1389_v11 = vand.u32 127, %v30_v5  ;;  %vm1320_vm6 = vmmov 1   ;;  %v1405_v12 = vld [vmem:[%s1613_s2] sm:$0xff]  }
   0x4   :  { %1013 = vmatprep.subr.msk.bf16.mxu0 %vm58_vm0, %v53_v2 }
   0x5   :  { %80 = vmatpush1.bf16.msra.mxu0 %v60_v4  ;;  %vm120_vm3 = vcmp.lt.s32.totalorder %v1382_v9, 2  ;;  %vm121_vm4 = vcmp.lt.s32.totalorder %v1389_v11, 32 }
   0x6   :  { %1107 = vmatprep.subr.bf16.mxu0 %v1317_v1  ;;  %1098 = vmatpush3.bf16.msra.mxu1 %v1377_v7  ;;  %vm122_vm5 = vmxor %vm120_vm3, %vm121_vm4 }
   0x7   :  { %1099 = vmatprep.subr.bf16.mxu1 %v1317_v1  ;;  %vm123_vm7 = vmxor %vm122_vm5, %vm1320_vm6 }
   0x8   :  { %1014 = vmatmul.mubr.msk.bf16.vlgmr.msra.gmra.mxu0 %vm54_vm1, %v1223_v6  ;;  %v1408_v13 = vsel %vm123_vm7, 1.0, %v1317_v1 }
   0x9   :  { %1108 = vmatpush3.bf16.msra.mxu0 %v1366_v3  ;;  %1115 = vmatprep.mubr.msk.bf16.mxu0 %vm1319_vm2, %v1317_v1 }
   0xa   :  { %1109 = vmatprep.subr.bf16.mxu0 %v1317_v1  ;;  %1100 = vmatpush3.bf16.msra.mxu1 %v1387_v10 }
   0xb   :  { %11 = vsyncpa [#allocation3], 0  ;;  %1101 = vmatprep.subr.bf16.mxu1 %v1317_v1  ;;  %v130_v14 = vmul.f32 0.0, %v1408_v13  ;;  %vm156_vm8 = vcmask 523264   ;;  %v32_v16 = vsub.s32 0, %v1382_v9  ;;  %v36_v18 = vsub.s32 1, %v1382_v9 }
   0xc   :  { %v28_v17 = vld [vmem:[%s1614_s3] sm:$0x3]  ;;  %s1321_s3 = smov 64   ;;  %s1322_s8 = smov 32   ;;  %vm238_vm9 = vcmask 261120   ;;  %vm995_vm12 = vcmask 123904  }
   0xd   :  { %1110 = vmatpush3.bf16.msra.mxu0 %v1377_v7  ;;  %v131_v15 = vpack.c.bf16 %v130_v14, %v130_v14  ;;  %v33_v19 = vrot.slane %v28_v17, %v32_v16  ;;  %v37_v20 = vrot.slane %v28_v17, %v36_v18 }
   0xe   :  { %1111 = vmatprep.subr.bf16.mxu0 %v1317_v1  ;;  %1102 = vmatpush3.bf16.msra.mxu1 %v1405_v12 }
   0xf   :  { %1119 = vmatprep.subr.bf16.mxu1 %v1317_v1 }
  0x11   :  { %1112 = vmatpush3.bf16.msra.mxu0 %v1387_v10  ;;  %1104 = vmatmul.mubr.msk.bf16.vlgmr.msra.gmra.mxu1 %vm156_vm8, %v131_v15 }
  0x12   :  { %1113 = vmatprep.subr.bf16.mxu0 %v1317_v1  ;;  %1120 = vmatpush3.bf16.msra.mxu1 %v1366_v3 }
  0x13   :  { %1127 = vmatprep.mubr.msk.bf16.mxu1 %vm1319_vm2, %v1317_v1  ;;  %1121 = vmatprep.subr.bf16.mxu1 %v1317_v1 }
  0x15   :  { %1114 = vmatpush3.bf16.msra.mxu0 %v1405_v12 }
  0x16   :  { %1131 = vmatprep.subr.bf16.mxu0 %v1317_v1  ;;  %1122 = vmatpush3.bf16.msra.mxu1 %v1377_v7 }
  0x17   :  { %1123 = vmatprep.subr.bf16.mxu1 %v1317_v1 }
  0x1a   :  { %1124 = vmatpush3.bf16.msra.mxu1 %v1387_v10 }
  0x1b   :  { %1125 = vmatprep.subr.bf16.mxu1 %v1317_v1 }
  0x1e   :  { %1126 = vmatpush3.bf16.msra.mxu1 %v1405_v12 }
  0x1f   :  { %1143 = vmatprep.subr.bf16.mxu1 %v1317_v1 }
  0xc8   :  { %v99_v21 = vpop.f32.mrf.mxu0 }
  0xc9   :  { %v100_v22 = vadd.f32 %v99_v21, %v33_v19 }
  0xca   :  { %v101_v23 = vpop.f32.mrf.mxu0 }
  0xcb   :  { %v102_v24 = vadd.f32 %v101_v23, %v37_v20  ;;  %v226_v29 = vrot.slane %v100_v22, 2  ;;  %v310_v30 = vrot.slane %v100_v22, 4  ;;  %v391_v35 = vrot.slane %v100_v22, 6 }
  0xcc   :  { %v103_v25 = vpop.f32.mrf.mxu0 }
  0xcd   :  { %v104_v26 = vadd.f32 %v103_v25, %v33_v19  ;;  %v475_v27 = vrot.slane %v102_v24, 4  ;;  %v559_v36 = vrot.slane %v102_v24, 2  ;;  %v723_v38 = vrot.slane %v102_v24, 6 }
  0xce   :  { %v105_v28 = vpop.f32.mrf.mxu0 }
  0xcf   :  { %v106_v31 = vadd.f32 %v105_v28, %v37_v20  ;;  %v1437_v32 = vsel %vm58_vm0, %v104_v26, %v475_v27  ;;  %v557_v33 = vrot.slane %v104_v26, 2  ;;  %v640_v34 = vrot.slane %v104_v26, 4 }
  0xd0   :  { %v721_v37 = vrot.slane %v104_v26, 6 }
  0xd1   :  { %v127_v39 = vrot.slane %v106_v31, 4  ;;  %v228_v40 = vrot.slane %v106_v31, 2  ;;  %v1440_v41 = vsel %vm58_vm0, %v310_v30, %v106_v31  ;;  %v393_v42 = vrot.slane %v106_v31, 6  ;;  %v194_v47 = vpop.f32.mrf.mxu1 }
  0xd2   :  { %v1443_v43 = vsel %vm58_vm0, %v557_v33, %v559_v36  ;;  %v1446_v44 = vsel %vm58_vm0, %v640_v34, %v102_v24  ;;  %v1449_v45 = vsel %vm58_vm0, %v721_v37, %v723_v38 }
  0xd3   :  { %v129_v46 = vsel %vm58_vm0, %v100_v22, %v127_v39  ;;  %v230_v48 = vsel %vm58_vm0, %v226_v29, %v228_v40  ;;  %v1454_v49 = vsel %vm58_vm0, %v391_v35, %v393_v42  ;;  %v1105_v51 = vpop.f32.mrf.mxu1 }
  0xd4   :  { %v200_v50 = vadd.f32 %v194_v47, %v129_v46 }
  0xd5   :  { %v197_v52 = vpop.f32.mrf.mxu1 }
  0xd6   :  { %1231 = vtanh.f32 %v200_v50  ;;  %v1021_v55 = vmul.f32 -1.442695, %v200_v50 }
  0xd7   :  { %v1106_v53 = vpop.f32.mrf.mxu1 }
  0xd8   :  { %1233 = vpow2.f32 %v1021_v55 }
  0xe3   :  { %v1232_v54 = vpop.eup %1231 }
  0xe4   :  { %210 = vrot.lane.b32.xlu0 %v1232_v54, %s1321_s3 }
  0xe5   :  { %v1234_v56 = vpop.eup %1233 }
  0xe6   :  { %v204_v57 = vadd.f32 1.0, %v1234_v56 }
  0xe8   :  { %1235 = vrcp.f32 %v204_v57 }
  0xf5   :  { %v1236_v58 = vpop.eup %1235 }
  0xf6   :  { %v208_v61 = vmul.f32 0.0, %v1236_v58 }
 0x156   :  { %v211_v59 = vpop.permute.xlu0 %210 }
 0x157   :  { %v213_v60 = vmul.f32 %v1236_v58, %v211_v59 }
 0x159   :  { %215 = vrot.lane.b32.xlu0 %v213_v60, %s1322_s8 }
 0x1cb   :  { %v216_v62 = vpop.permute.xlu0 %215 }
 0x1cc   :  { %v218_v63 = vadd.f32 %v216_v62, %v208_v61 }
 0x1ce   :  { %1237 = vtanh.f32 %v218_v63 }
 0x1db   :  { %v1238_v0 = vpop.eup %1237 }
 0x1dc   :  { %221 = vrot.lane.b32.xlu1 %v1238_v0, %s1321_s3 }
 0x24e   :  { %v222_v2 = vpop.permute.xlu1 %221 }
 0x24f   :  { %v224_v4 = vmul.f32 %v1236_v58, %v222_v2 }
 0x251   :  { %235 = vrot.lane.b32.xlu0 %v224_v4, %s1321_s3  ;;  %232 = vrot.lane.b32.xlu1 %v224_v4, %s1322_s8 }
 0x2c3   :  { %v236_v5 = vpop.permute.xlu0 %235  ;;  %v233_v6 = vpop.permute.xlu1 %232 }
 0x2c4   :  { %v239_v8 = vsel %vm238_vm9, %v233_v6, %v236_v5 }
 0x2c5   :  { %v240_v14 = vmul.f32 %v1408_v13, %v239_v8 }
 0x2c7   :  { %v241_v15 = vpack.c.bf16 %v240_v14, %v240_v14 }
 0x2c9   :  { %1116 = vmatmul.mubr.msk.bf16.vlgmr.msra.gmra.mxu0 %vm156_vm8, %v241_v15 }
 0x2ca   :  { %1132 = vmatpush3.bf16.msra.mxu0 %v1366_v3  ;;  %1139 = vmatprep.mubr.msk.bf16.mxu0 %vm1319_vm2, %v1317_v1 }
 0x2cb   :  { %1133 = vmatprep.subr.bf16.mxu0 %v1317_v1 }
 0x2ce   :  { %1134 = vmatpush3.bf16.msra.mxu0 %v1377_v7 }
 0x2cf   :  { %1135 = vmatprep.subr.bf16.mxu0 %v1317_v1 }
 0x2d2   :  { %1136 = vmatpush3.bf16.msra.mxu0 %v1387_v10 }
 0x2d3   :  { %1137 = vmatprep.subr.bf16.mxu0 %v1317_v1 }
 0x2d6   :  { %1138 = vmatpush3.bf16.msra.mxu0 %v1405_v12 }
 0x2d7   :  { %1155 = vmatprep.subr.bf16.mxu0 %v1317_v1 }
 0x389   :  { %v279_v16 = vpop.f32.mrf.mxu0 }
 0x38a   :  { %v285_v17 = vadd.f32 %v279_v16, %v230_v48 }
 0x38b   :  { %v1117_v18 = vpop.f32.mrf.mxu0 }
 0x38c   :  { %1239 = vtanh.f32 %v285_v17  ;;  %v1023_v22 = vmul.f32 -1.442695, %v285_v17 }
 0x38d   :  { %v282_v19 = vpop.f32.mrf.mxu0 }
 0x38e   :  { %1241 = vpow2.f32 %v1023_v22 }
 0x38f   :  { %v1118_v20 = vpop.f32.mrf.mxu0 }
 0x399   :  { %v1240_v21 = vpop.eup %1239 }
 0x39a   :  { %295 = vrot.lane.b32.xlu1 %v1240_v21, %s1321_s3 }
 0x39b   :  { %v1242_v23 = vpop.eup %1241 }
 0x39c   :  { %v289_v24 = vadd.f32 1.0, %v1242_v23 }
 0x39e   :  { %1243 = vrcp.f32 %v289_v24 }
 0x3ab   :  { %v1244_v25 = vpop.eup %1243 }
 0x3ac   :  { %v293_v28 = vmul.f32 %v1244_v25, %v218_v63 }
 0x40c   :  { %v296_v26 = vpop.permute.xlu1 %295 }
 0x40d   :  { %v298_v27 = vmul.f32 %v1244_v25, %v296_v26 }
 0x40f   :  { %300 = vrot.lane.b32.xlu0 %v298_v27, %s1322_s8 }
 0x481   :  { %v301_v29 = vpop.permute.xlu0 %300 }
 0x482   :  { %v303_v30 = vadd.f32 %v301_v29, %v293_v28 }
 0x484   :  { %1245 = vtanh.f32 %v303_v30 }
 0x491   :  { %v1246_v31 = vpop.eup %1245 }
 0x492   :  { %306 = vrot.lane.b32.xlu1 %v1246_v31, %s1321_s3 }
 0x504   :  { %v307_v33 = vpop.permute.xlu1 %306 }
 0x505   :  { %v309_v34 = vmul.f32 %v1244_v25, %v307_v33 }
 0x507   :  { %317 = vrot.lane.b32.xlu1 %v309_v34, %s1321_s3  ;;  %314 = vrot.lane.b32.xlu0 %v309_v34, %s1322_s8 }
 0x579   :  { %v318_v35 = vpop.permute.xlu1 %317  ;;  %v315_v36 = vpop.permute.xlu0 %314 }
 0x57a   :  { %v320_v37 = vsel %vm238_vm9, %v315_v36, %v318_v35 }
 0x57b   :  { %v321_v38 = vmul.f32 %v1408_v13, %v320_v37 }
 0x57d   :  { %v322_v39 = vpack.c.bf16 %v321_v38, %v321_v38 }
 0x57f   :  { %1128 = vmatmul.mubr.msk.bf16.vlgmr.msra.gmra.mxu1 %vm156_vm8, %v322_v39 }
 0x580   :  { %1144 = vmatpush3.bf16.msra.mxu1 %v1366_v3  ;;  %1151 = vmatprep.mubr.msk.bf16.mxu1 %vm1319_vm2, %v1317_v1 }
 0x581   :  { %1145 = vmatprep.subr.bf16.mxu1 %v1317_v1 }
 0x584   :  { %1146 = vmatpush3.bf16.msra.mxu1 %v1377_v7 }
 0x585   :  { %1147 = vmatprep.subr.bf16.mxu1 %v1317_v1 }
 0x588   :  { %1148 = vmatpush3.bf16.msra.mxu1 %v1387_v10 }
 0x589   :  { %1149 = vmatprep.subr.bf16.mxu1 %v1317_v1 }
 0x58c   :  { %1150 = vmatpush3.bf16.msra.mxu1 %v1405_v12 }
 0x58d   :  { %1167 = vmatprep.subr.bf16.mxu1 %v1317_v1 }
 0x63f   :  { %v360_v40 = vpop.f32.mrf.mxu1 }
 0x640   :  { %v366_v42 = vadd.f32 %v360_v40, %v1440_v41 }
 0x641   :  { %v1129_v46 = vpop.f32.mrf.mxu1 }
 0x642   :  { %1247 = vtanh.f32 %v366_v42  ;;  %v1025_v51 = vmul.f32 -1.442695, %v366_v42 }
 0x643   :  { %v363_v47 = vpop.f32.mrf.mxu1 }
 0x644   :  { %1249 = vpow2.f32 %v1025_v51 }
 0x645   :  { %v1130_v48 = vpop.f32.mrf.mxu1 }
 0x64f   :  { %v1248_v50 = vpop.eup %1247 }
 0x650   :  { %376 = vrot.lane.b32.xlu0 %v1248_v50, %s1321_s3 }
 0x651   :  { %v1250_v52 = vpop.eup %1249 }
 0x652   :  { %v370_v53 = vadd.f32 1.0, %v1250_v52 }
 0x654   :  { %1251 = vrcp.f32 %v370_v53 }
 0x661   :  { %v1252_v54 = vpop.eup %1251 }
 0x662   :  { %v374_v57 = vmul.f32 %v1252_v54, %v303_v30 }
 0x6c2   :  { %v377_v55 = vpop.permute.xlu0 %376 }
 0x6c3   :  { %v379_v56 = vmul.f32 %v1252_v54, %v377_v55 }
 0x6c5   :  { %381 = vrot.lane.b32.xlu1 %v379_v56, %s1322_s8 }
 0x737   :  { %v382_v58 = vpop.permute.xlu1 %381 }
 0x738   :  { %v384_v41 = vadd.f32 %v382_v58, %v374_v57 }
 0x73a   :  { %1253 = vtanh.f32 %v384_v41 }
 0x747   :  { %v1254_v59 = vpop.eup %1253 }
 0x748   :  { %387 = vrot.lane.b32.xlu0 %v1254_v59, %s1321_s3 }
 0x7ba   :  { %v388_v60 = vpop.permute.xlu0 %387 }
 0x7bb   :  { %v390_v61 = vmul.f32 %v1252_v54, %v388_v60 }
 0x7bd   :  { %400 = vrot.lane.b32.xlu0 %v390_v61, %s1321_s3  ;;  %397 = vrot.lane.b32.xlu1 %v390_v61, %s1322_s8 }
 0x82f   :  { %v401_v62 = vpop.permute.xlu0 %400  ;;  %v398_v63 = vpop.permute.xlu1 %397 }
 0x830   :  { %v403_v0 = vsel %vm238_vm9, %v398_v63, %v401_v62 }
 0x831   :  { %v404_v2 = vmul.f32 %v1408_v13, %v403_v0 }
 0x833   :  { %v405_v4 = vpack.c.bf16 %v404_v2, %v404_v2 }
 0x835   :  { %1140 = vmatmul.mubr.msk.bf16.vlgmr.msra.gmra.mxu0 %vm156_vm8, %v405_v4 }
 0x836   :  { %1156 = vmatpush3.bf16.msra.mxu0 %v1366_v3  ;;  %1163 = vmatprep.mubr.msk.bf16.mxu0 %vm1319_vm2, %v1317_v1 }
 0x837   :  { %1157 = vmatprep.subr.bf16.mxu0 %v1317_v1 }
 0x83a   :  { %1158 = vmatpush3.bf16.msra.mxu0 %v1377_v7 }
 0x83b   :  { %1159 = vmatprep.subr.bf16.mxu0 %v1317_v1 }
 0x83e   :  { %1160 = vmatpush3.bf16.msra.mxu0 %v1387_v10 }
 0x83f   :  { %1161 = vmatprep.subr.bf16.mxu0 %v1317_v1 }
 0x842   :  { %1162 = vmatpush3.bf16.msra.mxu0 %v1405_v12 }
 0x843   :  { %1179 = vmatprep.subr.bf16.mxu0 %v1317_v1 }
 0x8f5   :  { %v443_v5 = vpop.f32.mrf.mxu0 }
 0x8f6   :  { %v449_v6 = vadd.f32 %v443_v5, %v1454_v49 }
 0x8f7   :  { %v1141_v8 = vpop.f32.mrf.mxu0 }
 0x8f8   :  { %1255 = vtanh.f32 %v449_v6  ;;  %v1027_v17 = vmul.f32 -1.442695, %v449_v6 }
 0x8f9   :  { %v446_v14 = vpop.f32.mrf.mxu0 }
 0x8fa   :  { %1257 = vpow2.f32 %v1027_v17 }
 0x8fb   :  { %v1142_v15 = vpop.f32.mrf.mxu0 }
 0x905   :  { %v1256_v16 = vpop.eup %1255 }
 0x906   :  { %459 = vrot.lane.b32.xlu1 %v1256_v16, %s1321_s3 }
 0x907   :  { %v1258_v18 = vpop.eup %1257 }
 0x908   :  { %v453_v19 = vadd.f32 1.0, %v1258_v18 }
 0x90a   :  { %1259 = vrcp.f32 %v453_v19 }
 0x917   :  { %v1260_v20 = vpop.eup %1259 }
 0x918   :  { %v457_v23 = vmul.f32 %v1260_v20, %v384_v41 }
 0x978   :  { %v460_v21 = vpop.permute.xlu1 %459 }
 0x979   :  { %v462_v22 = vmul.f32 %v1260_v20, %v460_v21 }
 0x97b   :  { %464 = vrot.lane.b32.xlu0 %v462_v22, %s1322_s8 }
 0x9ed   :  { %v465_v24 = vpop.permute.xlu0 %464 }
 0x9ee   :  { %v467_v49 = vadd.f32 %v465_v24, %v457_v23 }
 0x9f0   :  { %1261 = vtanh.f32 %v467_v49 }
 0x9fd   :  { %v1262_v25 = vpop.eup %1261 }
 0x9fe   :  { %470 = vrot.lane.b32.xlu1 %v1262_v25, %s1321_s3 }
 0xa70   :  { %v471_v26 = vpop.permute.xlu1 %470 }
 0xa71   :  { %v473_v27 = vmul.f32 %v1260_v20, %v471_v26 }
 0xa73   :  { %482 = vrot.lane.b32.xlu1 %v473_v27, %s1321_s3  ;;  %479 = vrot.lane.b32.xlu0 %v473_v27, %s1322_s8 }
 0xae5   :  { %v483_v28 = vpop.permute.xlu1 %482  ;;  %v480_v29 = vpop.permute.xlu0 %479 }
 0xae6   :  { %v485_v30 = vsel %vm238_vm9, %v480_v29, %v483_v28 }
 0xae7   :  { %v486_v31 = vmul.f32 %v1408_v13, %v485_v30 }
 0xae9   :  { %v487_v33 = vpack.c.bf16 %v486_v31, %v486_v31 }
 0xaeb   :  { %1152 = vmatmul.mubr.msk.bf16.vlgmr.msra.gmra.mxu1 %vm156_vm8, %v487_v33 }
 0xaec   :  { %1168 = vmatpush3.bf16.msra.mxu1 %v1366_v3  ;;  %1175 = vmatprep.mubr.msk.bf16.mxu1 %vm1319_vm2, %v1317_v1 }
 0xaed   :  { %1169 = vmatprep.subr.bf16.mxu1 %v1317_v1 }
 0xaf0   :  { %1170 = vmatpush3.bf16.msra.mxu1 %v1377_v7 }
 0xaf1   :  { %1171 = vmatprep.subr.bf16.mxu1 %v1317_v1 }
 0xaf4   :  { %1172 = vmatpush3.bf16.msra.mxu1 %v1387_v10 }
 0xaf5   :  { %1173 = vmatprep.subr.bf16.mxu1 %v1317_v1 }
 0xaf8   :  { %1174 = vmatpush3.bf16.msra.mxu1 %v1405_v12 }
 0xaf9   :  { %1203 = vmatprep.subr.bf16.mxu1 %v1317_v1 }
 0xbab   :  { %v525_v34 = vpop.f32.mrf.mxu1 }
 0xbac   :  { %v531_v35 = vadd.f32 %v525_v34, %v1437_v32 }
 0xbad   :  { %v1153_v36 = vpop.f32.mrf.mxu1 }
 0xbae   :  { %1263 = vtanh.f32 %v531_v35  ;;  %v1029_v40 = vmul.f32 -1.442695, %v531_v35 }
 0xbaf   :  { %v528_v37 = vpop.f32.mrf.mxu1 }
 0xbb0   :  { %1265 = vpow2.f32 %v1029_v40 }
 0xbb1   :  { %v1154_v38 = vpop.f32.mrf.mxu1 }
 0xbbb   :  { %v1264_v39 = vpop.eup %1263 }
 0xbbc   :  { %541 = vrot.lane.b32.xlu0 %v1264_v39, %s1321_s3 }
 0xbbd   :  { %v1266_v42 = vpop.eup %1265 }
 0xbbe   :  { %v535_v46 = vadd.f32 1.0, %v1266_v42 }
 0xbc0   :  { %1267 = vrcp.f32 %v535_v46 }
 0xbcd   :  { %v1268_v47 = vpop.eup %1267 }
 0xbce   :  { %v539_v51 = vmul.f32 %v1268_v47, %v467_v49 }
 0xc2e   :  { %v542_v48 = vpop.permute.xlu0 %541 }
 0xc2f   :  { %v544_v50 = vmul.f32 %v1268_v47, %v542_v48 }
 0xc31   :  { %546 = vrot.lane.b32.xlu1 %v544_v50, %s1322_s8 }
 0xca3   :  { %v547_v52 = vpop.permute.xlu1 %546 }
 0xca4   :  { %v549_v32 = vadd.f32 %v547_v52, %v539_v51 }
 0xca6   :  { %1269 = vtanh.f32 %v549_v32 }
 0xcb3   :  { %v1270_v53 = vpop.eup %1269 }
 0xcb4   :  { %552 = vrot.lane.b32.xlu0 %v1270_v53, %s1321_s3 }
 0xd26   :  { %v553_v54 = vpop.permute.xlu0 %552 }
 0xd27   :  { %v555_v55 = vmul.f32 %v1268_v47, %v553_v54 }
 0xd29   :  { %566 = vrot.lane.b32.xlu0 %v555_v55, %s1321_s3  ;;  %563 = vrot.lane.b32.xlu1 %v555_v55, %s1322_s8 }
 0xd9b   :  { %v567_v56 = vpop.permute.xlu0 %566  ;;  %v564_v57 = vpop.permute.xlu1 %563 }
 0xd9c   :  { %v569_v58 = vsel %vm238_vm9, %v564_v57, %v567_v56 }
 0xd9d   :  { %v570_v41 = vmul.f32 %v1408_v13, %v569_v58 }
 0xd9f   :  { %v571_v59 = vpack.c.bf16 %v570_v41, %v570_v41 }
 0xda1   :  { %1164 = vmatmul.mubr.msk.bf16.vlgmr.msra.gmra.mxu0 %vm156_vm8, %v571_v59 }
 0xda2   :  { %1180 = vmatpush3.bf16.msra.mxu0 %v1366_v3  ;;  %1187 = vmatprep.mubr.msk.bf16.mxu0 %vm1319_vm2, %v1317_v1 }
 0xda3   :  { %1181 = vmatprep.subr.bf16.mxu0 %v1317_v1 }
 0xda6   :  { %1182 = vmatpush3.bf16.msra.mxu0 %v1377_v7 }
 0xda7   :  { %1183 = vmatprep.subr.bf16.mxu0 %v1317_v1 }
 0xdaa   :  { %1184 = vmatpush3.bf16.msra.mxu0 %v1387_v10 }
 0xdab   :  { %1185 = vmatprep.subr.bf16.mxu0 %v1317_v1 }
 0xdae   :  { %1186 = vmatpush3.bf16.msra.mxu0 %v1405_v12 }
 0xdaf   :  { %1191 = vmatprep.subr.bf16.mxu0 %v1317_v1 }
 0xe61   :  { %v609_v60 = vpop.f32.mrf.mxu0 }
 0xe62   :  { %v615_v3 = vadd.f32 %v609_v60, %v1443_v43 }
 0xe63   :  { %v1165_v61 = vpop.f32.mrf.mxu0 }
 0xe64   :  { %1271 = vtanh.f32 %v615_v3  ;;  %v1031_v7 = vmul.f32 -1.442695, %v615_v3 }
 0xe65   :  { %v612_v62 = vpop.f32.mrf.mxu0 }
 0xe66   :  { %1273 = vpow2.f32 %v1031_v7 }
 0xe67   :  { %v1166_v63 = vpop.f32.mrf.mxu0 }
 0xe68   :  { %v805_v63 = vmul.u32 2, %v1382_v9 }
 0xe6a   :  { %vm806_vm10 = vcmp.eq.s32.totalorder %v1389_v11, %v805_v63  ;;  %v810_v7 = vadd.s32 1, %v805_v63 }
 0xe6c   :  { %vm811_vm11 = vcmp.eq.s32.totalorder %v1389_v11, %v810_v7  ;;  %v1228_v11 = vld [vmem:[%s1615_s4 + $0x10] sm:$0xff]  }
 0xe6d   :  { %v1037_v9 = vsel %vm811_vm11, 1.0, %v1317_v1 }
 0xe71   :  { %v1272_v0 = vpop.eup %1271 }
 0xe72   :  { %625 = vrot.lane.b32.xlu1 %v1272_v0, %s1321_s3  ;;  %v1036_v0 = vsel %vm806_vm10, 1.0, %v1317_v1 }
 0xe73   :  { %v1274_v2 = vpop.eup %1273 }
 0xe74   :  { %v619_v10 = vadd.f32 1.0, %v1274_v2 }
 0xe76   :  { %1275 = vrcp.f32 %v619_v10 }
 0xe83   :  { %v1276_v4 = vpop.eup %1275 }
 0xe84   :  { %v623_v6 = vmul.f32 %v1276_v4, %v549_v32 }
 0xee4   :  { %v626_v5 = vpop.permute.xlu1 %625 }
 0xee5   :  { %v628_v12 = vmul.f32 %v1276_v4, %v626_v5  ;;  %v814_v5 = vpack.c.bf16 %v1037_v9, %v1037_v9 }
 0xee7   :  { %630 = vrot.lane.b32.xlu0 %v628_v12, %s1322_s8  ;;  %v1227_v12 = vld [vmem:[%s1615_s4 + $0x18] sm:$0xff]  }
 0xf59   :  { %v631_v8 = vpop.permute.xlu0 %630 }
 0xf5a   :  { %v633_v43 = vadd.f32 %v631_v8, %v623_v6  ;;  %v1229_v6 = vld [vmem:[%s1615_s4 + $0x8] sm:$0xff]   ;;  %v1230_v8 = vld [vmem:[%s1615_s4] sm:$0xff]   ;;  %s1323_s4 = smov [#allocation2]  }
 0xf5b   :  { %s1003_s19 = sshll.u32 %s1323_s4, 4  ;;  %s1004_s19 = int_to_ptr.vmem [resolvable:$true] %s1003_s19 }
 0xf5c   :  { %1277 = vtanh.f32 %v633_v43  ;;  %s1295_s20 = scalar_lea.vmem %s1004_s19, 32  ;;  %p1300_p1 = scmp.lt.s32.totalorder %s1004_s19, %s1004_s19 }
 0xf5d   :  { %p1296_p0 = scmp.ne.s32.totalorder %s1004_s19, %s1295_s20  ;;  %p1301_p2 = scmp.lt.s32.totalorder %s1295_s20, %s1295_s20 }
 0xf5f   :  { %p1302_p3 = por %p1301_p2, %p1300_p1 }
 0xf61   :  { %p1303_p4 = pnand %p1302_p3, %p1296_p0 }
 0xf69   :  { %v1278_v14 = vpop.eup %1277 }
 0xf6a   :  { %636 = vrot.lane.b32.xlu1 %v1278_v14, %s1321_s3 }
 0xfdc   :  { %v637_v15 = vpop.permute.xlu1 %636 }
 0xfdd   :  { %v639_v16 = vmul.f32 %v1276_v4, %v637_v15  ;;  %v809_v4 = vpack.c.bf16 %v1036_v0, %v1036_v0 }
 0xfdf   :  { %647 = vrot.lane.b32.xlu1 %v639_v16, %s1321_s3  ;;  %644 = vrot.lane.b32.xlu0 %v639_v16, %s1322_s8 }
0x1051   :  { %v648_v17 = vpop.permute.xlu1 %647  ;;  %v645_v18 = vpop.permute.xlu0 %644 }
0x1052   :  { %v650_v19 = vsel %vm238_vm9, %v645_v18, %v648_v17 }
0x1053   :  { %v651_v20 = vmul.f32 %v1408_v13, %v650_v19 }
0x1055   :  { %v652_v21 = vpack.c.bf16 %v651_v20, %v651_v20 }
0x1057   :  { %1176 = vmatmul.mubr.msk.bf16.vlgmr.msra.gmra.mxu1 %vm156_vm8, %v652_v21 }
0x1058   :  { %1211 = vmatprep.mubr.msk.bf16.mxu1 %vm1319_vm2, %v1317_v1  ;;  %1204 = vmatpush3.bf16.msra.mxu1 %v1227_v12 }
0x1059   :  { %1205 = vmatprep.subr.bf16.mxu1 %v1317_v1 }
0x105c   :  { %1206 = vmatpush3.bf16.msra.mxu1 %v1228_v11 }
0x105d   :  { %1207 = vmatprep.subr.bf16.mxu1 %v1317_v1 }
0x1060   :  { %1208 = vmatpush3.bf16.msra.mxu1 %v1229_v6 }
0x1061   :  { %1209 = vmatprep.subr.bf16.mxu1 %v1317_v1 }
0x1064   :  { %1210 = vmatpush3.bf16.msra.mxu1 %v1230_v8 }
0x1117   :  { %v690_v22 = vpop.f32.mrf.mxu1 }
0x1118   :  { %v696_v23 = vadd.f32 %v690_v22, %v1446_v44 }
0x1119   :  { %v1177_v24 = vpop.f32.mrf.mxu1 }
0x111a   :  { %1279 = vtanh.f32 %v696_v23  ;;  %v1033_v27 = vmul.f32 -1.442695, %v696_v23 }
0x111b   :  { %v693_v49 = vpop.f32.mrf.mxu1 }
0x111c   :  { %1281 = vpow2.f32 %v1033_v27 }
0x111d   :  { %v1178_v25 = vpop.f32.mrf.mxu1 }
0x1127   :  { %v1280_v26 = vpop.eup %1279 }
0x1128   :  { %706 = vrot.lane.b32.xlu0 %v1280_v26, %s1321_s3 }
0x1129   :  { %v1282_v28 = vpop.eup %1281 }
0x112a   :  { %v700_v29 = vadd.f32 1.0, %v1282_v28 }
0x112c   :  { %1283 = vrcp.f32 %v700_v29 }
0x1139   :  { %v1284_v30 = vpop.eup %1283 }
0x113a   :  { %v704_v34 = vmul.f32 %v1284_v30, %v633_v43 }
0x119a   :  { %v707_v31 = vpop.permute.xlu0 %706 }
0x119b   :  { %v709_v33 = vmul.f32 %v1284_v30, %v707_v31 }
0x119d   :  { %711 = vrot.lane.b32.xlu1 %v709_v33, %s1322_s8 }
0x120f   :  { %v712_v35 = vpop.permute.xlu1 %711 }
0x1210   :  { %v714_v44 = vadd.f32 %v712_v35, %v704_v34 }
0x1212   :  { %1285 = vtanh.f32 %v714_v44 }
0x121f   :  { %v1286_v36 = vpop.eup %1285 }
0x1220   :  { %717 = vrot.lane.b32.xlu0 %v1286_v36, %s1321_s3 }
0x1292   :  { %v718_v37 = vpop.permute.xlu0 %717 }
0x1293   :  { %v720_v38 = vmul.f32 %v1284_v30, %v718_v37 }
0x1295   :  { %730 = vrot.lane.b32.xlu0 %v720_v38, %s1321_s3  ;;  %727 = vrot.lane.b32.xlu1 %v720_v38, %s1322_s8 }
0x1307   :  { %v731_v39 = vpop.permute.xlu0 %730  ;;  %v728_v40 = vpop.permute.xlu1 %727 }
0x1308   :  { %v733_v42 = vsel %vm238_vm9, %v728_v40, %v731_v39 }
0x1309   :  { %v734_v46 = vmul.f32 %v1408_v13, %v733_v42 }
0x130b   :  { %v735_v47 = vpack.c.bf16 %v734_v46, %v734_v46 }
0x130d   :  { %1188 = vmatmul.mubr.msk.bf16.vlgmr.msra.gmra.mxu0 %vm156_vm8, %v735_v47 }
0x130e   :  { %1193 = vmatprep.mubr.msk.bf16.mxu0 %vm1319_vm2, %v1317_v1 }
0x13cd   :  { %v773_v48 = vpop.f32.mrf.mxu0 }
0x13ce   :  { %v779_v50 = vadd.f32 %v773_v48, %v1449_v45 }
0x13cf   :  { %v1189_v51 = vpop.f32.mrf.mxu0 }
0x13d0   :  { %1287 = vtanh.f32 %v779_v50  ;;  %v1035_v54 = vmul.f32 -1.442695, %v779_v50 }
0x13d1   :  { %v776_v52 = vpop.f32.mrf.mxu0 }
0x13d2   :  { %1289 = vpow2.f32 %v1035_v54 }
0x13d3   :  { %v1190_v32 = vpop.f32.mrf.mxu0 }
0x13dd   :  { %v1288_v53 = vpop.eup %1287 }
0x13de   :  { %789 = vrot.lane.b32.xlu1 %v1288_v53, %s1321_s3 }
0x13df   :  { %v1290_v55 = vpop.eup %1289 }
0x13e0   :  { %v783_v13 = vadd.f32 1.0, %v1290_v55 }
0x13e2   :  { %1291 = vrcp.f32 %v783_v13 }
0x13ef   :  { %v1292_v56 = vpop.eup %1291 }
0x13f0   :  { %v787_v41 = vmul.f32 %v1292_v56, %v714_v44 }
0x1450   :  { %v790_v57 = vpop.permute.xlu1 %789 }
0x1451   :  { %v792_v58 = vmul.f32 %v1292_v56, %v790_v57 }
0x1453   :  { %794 = vrot.lane.b32.xlu0 %v792_v58, %s1322_s8 }
0x14c5   :  { %v795_v59 = vpop.permute.xlu0 %794 }
0x14c6   :  { %v797_v45 = vadd.f32 %v795_v59, %v787_v41 }
0x14c8   :  { %1293 = vtanh.f32 %v797_v45 }
0x14d5   :  { %v1294_v60 = vpop.eup %1293 }
0x14d6   :  { %800 = vrot.lane.b32.xlu1 %v1294_v60, %s1321_s3 }
0x1548   :  { %v801_v3 = vpop.permute.xlu1 %800 }
0x1549   :  { %v803_v61 = vmul.f32 %v1292_v56, %v801_v3 }
0x154b   :  { %v804_v62 = vpack.c.bf16 %v803_v61, %v803_v61 }
0x154d   :  { %816 = vrot.lane.b32.xlu0 %v804_v62, %s1322_s8 }
0x15bf   :  { %v817_v2 = vpop.permute.xlu0 %816 }
0x15c0   :  { %v822_v10 = vsel %vm58_vm0, %v817_v2, 0 }
0x15c1   :  { %1192 = vmatpush3.bf16.msra.mxu0 %v822_v10 }
0x15c2   :  { %1197 = vmatprep.subr.bf16.mxu0 %v1317_v1 }
0x15c4   :  { %1194 = vmatmul.mubr.msk.bf16.vlgmr.msra.gmra.mxu0 %vm54_vm1, %v809_v4 }
0x15c5   :  { %1198 = vmatpush3.bf16.msra.mxu0 %v822_v10  ;;  %1199 = vmatprep.mubr.msk.bf16.mxu0 %vm1319_vm2, %v1317_v1  ;;  %v1040_v1 = vld [vmem:[%s1616_s5] ss:$0 sm:$0xff] }
0x15cc   :  { %1200 = vmatmul.mubr.msk.bf16.vlgmr.msra.gmra.mxu0 %vm54_vm1, %v814_v5 }
0x1684   :  { %v858_v43 = vpop.f32.mrf.mxu0 }
0x1686   :  { %v1195_v14 = vpop.f32.mrf.mxu0 }
0x1688   :  { %v861_v15 = vpop.f32.mrf.mxu0 }
0x168a   :  { %v1196_v16 = vpop.f32.mrf.mxu0 }
0x168c   :  { %v901_v17 = vpop.f32.mrf.mxu0 }
0x168d   :  { %908 = vrot.lane.b32.xlu1 %v901_v17, %s1322_s8 }
0x168e   :  { %v1201_v18 = vpop.f32.mrf.mxu0 }
0x1690   :  { %v904_v19 = vpop.f32.mrf.mxu0 }
0x1692   :  { %v1202_v20 = vpop.f32.mrf.mxu0 }
0x16ff   :  { %v909_v21 = vpop.permute.xlu1 %908 }
0x1700   :  { %v911_v22 = vsel %vm238_vm9, %v858_v43, %v909_v21 }
0x1701   :  { %v912_v23 = vpack.c.bf16 %v911_v22, %v911_v22 }
0x1703   :  { %1212 = vmatmul.mubr.msk.bf16.vlgmr.msra.gmra.mxu1 %vm156_vm8, %v912_v23 }
0x17c3   :  { %v989_v24 = vpop.f32.mrf.mxu1 }
0x17c4   :  { %v990_v49 = vadd.f32 %v1040_v1, %v989_v24 }
0x17c5   :  { %v1213_v25 = vpop.f32.mrf.mxu1 }
0x17c6   :  { %996 = vst.msk [vmem:[#allocation2] sm:$0x3] %vm995_vm12, %v990_v49 }
0x17c7   :  { %v992_v26 = vpop.f32.mrf.mxu1 }
0x17c8   :  { %1306 = shalt.err (!%p1303_p4)
}
0x17c9   :  { %1006 = dma.vmem_to_hbm [thread:$0]  %s1004_s19, 32, %s1617_s6, [#allocation3]   ;;  %v1214_v27 = vpop.f32.mrf.mxu1 }
0x17ca   :  { %1315 = dma.done.wait [#allocation3], 32  }
0x17cb   :  { %1316 = vsyncadd [#allocation3], 4294967264 }
0x17cc   :  { %1010 = vsyncpa [#allocation3], 1 }

</bundles_post_ra>
